<compile_context>
chip_gen: v5e
topology: v5e:2x2
jax: 0.10.0
libtpu: 0.0.40
codegen_flags: <defaults>
</compile_context>

<pallas_src>
import functools

import jax
import jax.numpy as jnp
from jax.experimental import pallas as pl
from jax.experimental.pallas import tpu as pltpu

_MIB = 1024 * 1024


def _round_up(n, m):
    return -(-n // m) * m


def _sublane_align(dtype):
    """Rows per sublane tile: 8 for 4-byte, 16 for 2-byte, 32 for 1-byte."""
    return max(8, 32 // jnp.dtype(dtype).itemsize)


def _query_vmem_capacity():
    """Physical VMEM bytes for this TPU generation, or None if unavailable."""
    try:
        return int(pltpu.get_tpu_info().vmem_capacity_bytes)
    except Exception:
        return None


def _choose_s_tiling(S, align, ts_cap):
    """Pick (ts, S_pad) with S_pad % ts == 0 and ts % align == 0 (or ts == S_pad)."""
    ts_cap = max(ts_cap, align)
    s_aligned = _round_up(S, align)
    if s_aligned <= ts_cap:
        # whole (sublane-padded) S in a single grid step
        return s_aligned, s_aligned
    # prefer an aligned divisor of S: no zero-padding, no extra HBM traffic
    d = (ts_cap // align) * align
    while d >= align:
        if S % d == 0:
            return d, S
        d -= align
    # fall back to zero-padding S up to a multiple of the largest aligned tile
    ts = (ts_cap // align) * align
    return ts, _round_up(S, ts)


# --------------------------------------------------------------------------
# kernels
# --------------------------------------------------------------------------
def _mean_pool_kernel(x_ref, o_ref, acc_ref, *, inv_s):
    # x_ref: (tb, ts, th), o_ref: (tb, th), acc_ref: (tb, th) f32 scratch
    si = pl.program_id(2)

    @pl.when(si == 0)
    def _init():
        acc_ref[...] = jnp.zeros_like(acc_ref)

    # partial sum over this S tile (sublane reduce, hidden under the DMA)
    acc_ref[...] += jnp.sum(x_ref[...].astype(jnp.float32), axis=1)

    @pl.when(si == pl.num_programs(2) - 1)
    def _finalize():
        # divide by the ORIGINAL S (zero padding contributes nothing)
        o_ref[...] = (acc_ref[...] * inv_s).astype(o_ref.dtype)


def _masked_pool_kernel(mask_ref, x_ref, o_ref, acc_ref, len_ref):
    # mask_ref: (tb, ts, 1) -- S on sublanes, same layout as x (no relayout)
    # x_ref: (tb, ts, th), o_ref: (tb, th)
    # acc_ref: (tb, th) f32 scratch, len_ref: (tb, 1) f32 scratch
    si = pl.program_id(2)

    @pl.when(si == 0)
    def _init():
        acc_ref[...] = jnp.zeros_like(acc_ref)
        len_ref[...] = jnp.zeros_like(len_ref)

    m = mask_ref[...].astype(jnp.float32)            # (tb, ts, 1)
    x = x_ref[...].astype(jnp.float32)               # (tb, ts, th)
    # weighted partial sum == partial bmm(mask, x): lane-broadcast multiply
    # + sublane reduce on the VPU (memory-bound op, keep the MXU out of it).
    acc_ref[...] += jnp.sum(m * x, axis=1)           # (tb, th)
    len_ref[...] += jnp.sum(m, axis=1)               # (tb, 1)

    @pl.when(si == pl.num_programs(2) - 1)
    def _finalize():
        # exact divide: runs once per output tile, off the hot loop
        o_ref[...] = (acc_ref[...] / (len_ref[...] + 1e-16)).astype(o_ref.dtype)


# --------------------------------------------------------------------------
# wrapper
# --------------------------------------------------------------------------
def average_pooling(x, mask=None, *, tb_pref=8, ts_pref=1024):
    """Pallas equivalent of AveragePooling.forward.

    x:    (B, S, H) float array
    mask: optional (B, 1, S) float array (1.0 for valid tokens, 0.0 for pad)
    returns (B, H)
    """
    B, S, H = x.shape
    itemsize = jnp.dtype(x.dtype).itemsize
    sub = _sublane_align(x.dtype)
    if mask is not None:
        sub = max(sub, _sublane_align(mask.dtype))
    out_shape = jax.ShapeDtypeStruct((B, H), x.dtype)

    # ---- generation-aware VMEM budget ------------------------------------
    vmem_cap = _query_vmem_capacity()
    if vmem_cap is None:
        vmem_limit = 48 * _MIB          # conservative: fits every generation
        two_tc = False
    else:
        vmem_limit = min((vmem_cap * 3) // 4, 112 * _MIB)
        two_tc = vmem_cap <= 96 * _MIB  # v7x-class: 64 MiB per TC, 2 TCs/chip

    # ---- batch tile: output sublane dim must be a multiple of 8 or full B
    tb = tb_pref if (B % tb_pref == 0 and tb_pref % 8 == 0) else B

    # ---- hidden tile: keep H untiled for contiguous HBM slabs; split only
    #      to give both v7x TensorCores work when the B grid is degenerate.
    th = H
    if two_tc and (B // tb) < 2 and H % 256 == 0:
        th = H // 2

    # ---- sequence tile: sized from the VMEM budget (x is double-buffered);
    #      leave headroom for output / accumulator / mask buffers and
    #      compiler-internal scratch (e.g. a materialized cast temp).
    x_budget = int(vmem_limit * 0.45)

    def _ts_cap(th_):
        return x_budget // (2 * tb * th_ * itemsize)

    # if even a minimal S tile does not fit, split H further (lane-dense halves)
    while _ts_cap(th) < sub and th % 256 == 0:
        th //= 2

    ts_cap = max(min(ts_pref, _ts_cap(th)), sub)
    ts, S_pad = _choose_s_tiling(S, sub, ts_cap)

    if S_pad != S:
        x = jnp.pad(x, ((0, 0), (0, S_pad - S), (0, 0)))

    grid = (B // tb, H // th, S_pad // ts)
    cparams = pltpu.CompilerParams(
        dimension_semantics=("parallel", "parallel", "arbitrary"),
        vmem_limit_bytes=vmem_limit,
    )

    if mask is None:
        kernel = functools.partial(_mean_pool_kernel, inv_s=1.0 / S)
        return pl.pallas_call(
            kernel,
            out_shape=out_shape,
            grid_spec=pltpu.PrefetchScalarGridSpec(
                num_scalar_prefetch=0,
                grid=grid,
                in_specs=[
                    pl.BlockSpec((tb, ts, th), lambda bi, hi, si: (bi, si, hi)),
                ],
                out_specs=pl.BlockSpec((tb, th), lambda bi, hi, si: (bi, hi)),
                scratch_shapes=[pltpu.VMEM((tb, th), jnp.float32)],
            ),
            compiler_params=cparams,
        )(x)

    # masked path: present mask as (B, S, 1) so S sits on sublanes like x.
    mask3d = mask.reshape(B, S, 1)
    if S_pad != S:
        mask3d = jnp.pad(mask3d, ((0, 0), (0, S_pad - S), (0, 0)))

    return pl.pallas_call(
        _masked_pool_kernel,
        out_shape=out_shape,
        grid_spec=pltpu.PrefetchScalarGridSpec(
            num_scalar_prefetch=0,
            grid=grid,
            in_specs=[
                pl.BlockSpec((tb, ts, 1), lambda bi, hi, si: (bi, si, 0)),
                pl.BlockSpec((tb, ts, th), lambda bi, hi, si: (bi, si, hi)),
            ],
            out_specs=pl.BlockSpec((tb, th), lambda bi, hi, si: (bi, hi)),
            scratch_shapes=[
                pltpu.VMEM((tb, th), jnp.float32),
                pltpu.VMEM((tb, 1), jnp.float32),
            ],
        ),
        compiler_params=cparams,
    )(mask3d, x)
    # TODO(synk): PyTorch's `.squeeze()` would also drop a size-1 hidden dim
    # (H == 1); callers here always get (B, H).  (For B == 1 the PyTorch
    # divide re-broadcasts back to (1, H), which matches this output.)


if __name__ == "__main__":
    key = jax.random.PRNGKey(0)
    kx, kx2, kx3, kx4 = jax.random.split(key, 4)

    # ---------------- small shapes (single grid step) ----------------
    B, S, H = 2, 8, 32
    x = jax.random.normal(kx, (B, S, H), dtype=jnp.float32)
    valid_lens = jnp.array([5, 8], dtype=jnp.int32)
    mask = (jnp.arange(S)[None, :] < valid_lens[:, None]).astype(jnp.float32)
    mask = mask.reshape(B, 1, S)

    out_mean = jax.block_until_ready(average_pooling(x))
    ref_mean = jnp.mean(x, axis=1)
    assert out_mean.shape == (B, H)
    assert jnp.allclose(out_mean, ref_mean, atol=1e-5, rtol=1e-4)

    out_masked = jax.block_until_ready(average_pooling(x, mask))
    ref_masked = jnp.einsum("bos,bsh->bh", mask, x) / (
        jnp.sum(mask, axis=-1) + 1e-16
    )
    assert out_masked.shape == (B, H)
    assert jnp.allclose(out_masked, ref_masked, atol=1e-5, rtol=1e-4)

    # ------------- bigger shapes (still single S step, th=H) -------------
    B2, S2, H2 = 4, 256, 256
    x2 = jax.random.normal(kx2, (B2, S2, H2), dtype=jnp.float32)
    valid_lens2 = jnp.array([17, 256, 128, 200], dtype=jnp.int32)
    mask2 = (jnp.arange(S2)[None, :] < valid_lens2[:, None]).astype(jnp.float32)
    mask2 = mask2.reshape(B2, 1, S2)

    out_mean2 = jax.block_until_ready(average_pooling(x2))
    ref_mean2 = jnp.mean(x2, axis=1)
    assert out_mean2.shape == (B2, H2)
    assert jnp.allclose(out_mean2, ref_mean2, atol=1e-5, rtol=1e-4)

    out_masked2 = jax.block_until_ready(average_pooling(x2, mask2))
    ref_masked2 = jnp.einsum("bos,bsh->bh", mask2, x2) / (
        jnp.sum(mask2, axis=-1) + 1e-16
    )
    assert out_masked2.shape == (B2, H2)
    assert jnp.allclose(out_masked2, ref_masked2, atol=1e-5, rtol=1e-4)

    # ------- ragged S: exercises zero-padding + multi-step S reduction -------
    B3, S3, H3 = 2, 300, 128
    x3 = jax.random.normal(kx3, (B3, S3, H3), dtype=jnp.float32)
    valid_lens3 = jnp.array([123, 300], dtype=jnp.int32)
    mask3 = (jnp.arange(S3)[None, :] < valid_lens3[:, None]).astype(jnp.float32)
    mask3 = mask3.reshape(B3, 1, S3)

    out_mean3 = jax.block_until_ready(average_pooling(x3, ts_pref=128))
    ref_mean3 = jnp.mean(x3, axis=1)
    assert out_mean3.shape == (B3, H3)
    assert jnp.allclose(out_mean3, ref_mean3, atol=1e-5, rtol=1e-4)

    out_masked3 = jax.block_until_ready(average_pooling(x3, mask3, ts_pref=128))
    ref_masked3 = jnp.einsum("bos,bsh->bh", mask3, x3) / (
        jnp.sum(mask3, axis=-1) + 1e-16
    )
    assert out_masked3.shape == (B3, H3)
    assert jnp.allclose(out_masked3, ref_masked3, atol=1e-5, rtol=1e-4)

    # ------------- bf16: exercises dtype-aware sublane alignment -------------
    B4, S4, H4 = 2, 24, 128
    x4 = jax.random.normal(kx4, (B4, S4, H4), dtype=jnp.float32).astype(jnp.bfloat16)
    out_mean4 = jax.block_until_ready(average_pooling(x4))
    ref_mean4 = jnp.mean(x4.astype(jnp.float32), axis=1).astype(jnp.bfloat16)
    assert out_mean4.shape == (B4, H4)
    assert jnp.allclose(
        out_mean4.astype(jnp.float32), ref_mean4.astype(jnp.float32),
        atol=2e-2, rtol=2e-2,
    )

    print("KERNEL_OK")
</pallas_src>

<mosaic_0001>
module attributes {stable_mosaic.version = 11 : i64} {
  func.func @_mean_pool_kernel(%arg0: i32, %arg1: i32, %arg2: i32, %arg3: memref<2x8x32xf32, #tpu.memory_space<vmem>>, %arg4: memref<2x32xf32, #tpu.memory_space<vmem>>, %arg5: memref<2x32xf32, #tpu.memory_space<vmem>>) attributes {dimension_semantics = [#tpu.dimension_semantics<parallel>, #tpu.dimension_semantics<parallel>, #tpu.dimension_semantics<arbitrary>], iteration_bounds = array<i64: 1, 1, 1>, scalar_prefetch = 0 : i64, scratch_operands = 1 : i64, tpu.core_type = #tpu.core_type<tc>, window_params = [{transform_indices = @transform_0, window_bounds = array<i64: 2, 8, 32>}, {transform_indices = @transform_1, window_bounds = array<i64: 2, 32>}]} {
    %c0_i32 = arith.constant 0 : i32
    %0 = arith.cmpi eq, %arg2, %c0_i32 : i32
    %1 = arith.extui %0 : i1 to i32
    %c0_i32_0 = arith.constant 0 : i32
    %2 = arith.cmpi ne, %1, %c0_i32_0 : i32
    scf.if %2 {
      %cst_9 = arith.constant 0.000000e+00 : f32
      %11 = vector.broadcast %cst_9 : f32 to vector<2x32xf32>
      %c0_10 = arith.constant 0 : index
      %c0_11 = arith.constant 0 : index
      %12 = vector.load %arg5[%c0_10, %c0_11] : memref<2x32xf32, #tpu.memory_space<vmem>>, vector<2x32xf32>
      tpu.vector_store %arg5[%c0_10, %c0_11], %11 {strides = array<i32>} : memref<2x32xf32, #tpu.memory_space<vmem>>, vector<2x32xf32>,
    } else {
    }
    %c0 = arith.constant 0 : index
    %c0_1 = arith.constant 0 : index
    %3 = vector.load %arg5[%c0, %c0_1] : memref<2x32xf32, #tpu.memory_space<vmem>>, vector<2x32xf32>
    %c0_2 = arith.constant 0 : index
    %c0_3 = arith.constant 0 : index
    %c0_4 = arith.constant 0 : index
    %4 = vector.load %arg3[%c0_2, %c0_3, %c0_4] : memref<2x8x32xf32, #tpu.memory_space<vmem>>, vector<2x8x32xf32>
    %cst = arith.constant dense<0.000000e+00> : vector<2x32xf32>
    %5 = vector.multi_reduction <add>, %4, %cst [1] : vector<2x8x32xf32> to vector<2x32xf32>
    %6 = arith.addf %3, %5 : vector<2x32xf32>
    %c0_5 = arith.constant 0 : index
    %c0_6 = arith.constant 0 : index
    %7 = vector.load %arg5[%c0_5, %c0_6] : memref<2x32xf32, #tpu.memory_space<vmem>>, vector<2x32xf32>
    tpu.vector_store %arg5[%c0_5, %c0_6], %6 {strides = array<i32>} : memref<2x32xf32, #tpu.memory_space<vmem>>, vector<2x32xf32>,
    %c0_i32_7 = arith.constant 0 : i32
    %8 = arith.cmpi eq, %arg2, %c0_i32_7 : i32
    %9 = arith.extui %8 : i1 to i32
    %c0_i32_8 = arith.constant 0 : i32
    %10 = arith.cmpi ne, %9, %c0_i32_8 : i32
    scf.if %10 {
      %c0_9 = arith.constant 0 : index
      %c0_10 = arith.constant 0 : index
      %11 = vector.load %arg5[%c0_9, %c0_10] : memref<2x32xf32, #tpu.memory_space<vmem>>, vector<2x32xf32>
      %cst_11 = arith.constant 1.250000e-01 : f32
      %12 = vector.broadcast %cst_11 : f32 to vector<2x32xf32>
      %13 = arith.mulf %11, %12 : vector<2x32xf32>
      %c0_12 = arith.constant 0 : index
      %c0_13 = arith.constant 0 : index
      %14 = vector.load %arg4[%c0_12, %c0_13] : memref<2x32xf32, #tpu.memory_space<vmem>>, vector<2x32xf32>
      tpu.vector_store %arg4[%c0_12, %c0_13], %13 {strides = array<i32>} : memref<2x32xf32, #tpu.memory_space<vmem>>, vector<2x32xf32>,
    } else {
    }
    return
  }
  func.func @transform_0(%arg0: i32, %arg1: i32, %arg2: i32) -> (i32, i32, i32) {
    %c0_i32 = arith.constant 0 : i32
    return %arg0, %arg2, %arg1 : i32, i32, i32
  }
  func.func @transform_1(%arg0: i32, %arg1: i32, %arg2: i32) -> (i32, i32) {
    %c0_i32 = arith.constant 0 : i32
    return %arg0, %arg1 : i32, i32
  }
}

</mosaic_0001>

<bundles_post_ra>
// kernel: tpu_custom_call.1
= control target key start
LH: loop header
LB: loop body
LE: loop exit
PB: predicated region body
PF: predicated region fallthrough
CT: control target
= control target key end

     0   :  { %6 = vsyncpa [#allocation4], 0  ;;  %s161_s0 = inlined_call_operand.hbm [shape: f32[2,8,32], index: 0, kind: input, shape index: {}]   ;;  %s162_s1 = inlined_call_operand.hbm [shape: f32[2,32], index: 1, kind: output, shape index: {}]  }
   0x1   :  { %7 = vsyncpa [#allocation5], 0  ;;  %s12_s8 = sshll.u32 %s161_s0, 4  ;;  %s137_s9 = smov [#allocation3]   ;;  %s13_s8 = int_to_ptr.hbm [resolvable:$true] %s12_s8 }
   0x2   :  { %s14_s10 = sshll.u32 %s137_s9, 4  ;;  %s138_s11 = smov 128   ;;  %s15_s10 = int_to_ptr.vmem [resolvable:$true] %s14_s10 }
   0x3   :  { %s139_s12 = smov 8  }
   0x4   :  { %20 = dma.hbm_to_vmem [thread:$0]  %s13_s8, 256, %s15_s10, [#allocation4], %s138_s11, %s138_s11, %s139_s12  }
   0x5   :  { %133 = dma.done.wait [#allocation4], 256  }
   0x6   :  { %134 = vsyncadd [#allocation4], 4294967040  ;;  %vm29_vm0 = vcmask 254976   ;;  %v140_v0 = vmov 0.0   ;;  %vm34_vm1 = vcmask 261120   ;;  %v32_v1 = vld [vmem:[#allocation3] sm:$0xff] }
   0x7   :  { %30 = vst.msk [vmem:[#allocation2] sm:$0x3] %vm29_vm0, %v140_v0  ;;  %v33_v2 = vld [vmem:[#allocation3 + $0x8] sm:$0xff]  ;;  %v35_v3 = vsel %vm34_vm1, %v32_v1, 0.0  ;;  %vm51_vm2 = vcmask 1041409   ;;  %s141_s0 = smov [#allocation6]  }
   0x8   :  { %v42_v4 = vsel %vm34_vm1, %v33_v2, 0.0  ;;  %v36_v5 = vrot.slane %v35_v3, 4  ;;  %s68_s13 = sshll.u32 %s141_s0, 4  ;;  %s70_s16 = sshll.u32 %s162_s1, 4  ;;  %s69_s13 = int_to_ptr.vmem [resolvable:$true] %s68_s13  ;;  %s71_s16 = int_to_ptr.hbm [resolvable:$true] %s70_s16 }
   0x9   :  { %v43_v6 = vrot.slane %v42_v4, 4 }
   0xa   :  { %v37_v7 = vadd.f32 %v36_v5, %v35_v3 }
   0xb   :  { %v44_v8 = vadd.f32 %v43_v6, %v42_v4 }
   0xc   :  { %v38_v9 = vrot.slane %v37_v7, 2 }
   0xd   :  { %v45_v10 = vrot.slane %v44_v8, 2 }
   0xe   :  { %v39_v11 = vadd.f32 %v38_v9, %v37_v7  ;;  %v31_v15 = vld [vmem:[#allocation2] sm:$0x3] }
   0xf   :  { %v46_v12 = vadd.f32 %v45_v10, %v44_v8 }
  0x10   :  { %v40_v13 = vrot.slane %v39_v11, 1 }
  0x11   :  { %v47_v14 = vrot.slane %v46_v12, 1 }
  0x12   :  { %v41_v16 = vadd.f32 %v40_v13, %v39_v11 }
  0x13   :  { %v48_v17 = vadd.f32 %v47_v14, %v46_v12 }
  0x15   :  { %v52_v18 = vsel %vm51_vm2, %v48_v17, %v41_v16 }
  0x16   :  { %v54_v19 = vadd.f32 %v52_v18, %v31_v15 }
  0x18   :  { %56 = vst.msk [vmem:[#allocation2] sm:$0x3] %vm29_vm0, %v54_v19 }
  0x1f   :  { %v60_v20 = vld [vmem:[#allocation2] sm:$0x3] }
  0x20   :  { %v61_v21 = vmul.f32 0.125, %v60_v20 }
  0x22   :  { %62 = vst.msk [vmem:[#allocation6] sm:$0x3] %vm29_vm0, %v61_v21 }
  0x23   :  { %73 = dma.vmem_to_hbm [thread:$0]  %s69_s13, 32, %s71_s16, [#allocation5]  }
  0x24   :  { %135 = dma.done.wait [#allocation5], 32  }
  0x25   :  { %136 = vsyncadd [#allocation5], 4294967264 }
  0x26   :  { %78 = vsyncpa [#allocation4], 1 }
  0x27   :  { %79 = vsyncpa [#allocation5], 1 }

</bundles_post_ra>
